<compile_context>
chip_gen: v6e
topology: v6e:2x2x1
jax: 0.10.0
libtpu: 0.0.40
codegen_flags: <defaults>
</compile_context>

<pallas_src>
import jax
import jax.numpy as jnp
from jax.experimental import pallas as pl
from jax.experimental.pallas import tpu as pltpu

IN_FEATURES = 180
OUT_FEATURES = 64
CLAMP_MIN = 0.5
CLAMP_MAX = 0.7071067811865476


def _round_up(x, m):
    return ((x + m - 1) // m) * m


def linear_clamp_kernel(x_ref, w_ref, b_ref, o_ref):
    # x: (TB, K), w: (K, 64), b: (1, 64) -> o: (TB, 64)
    y = jax.lax.dot_general(
        x_ref[...], w_ref[...],
        dimension_numbers=(((1,), (0,)), ((), ())),   # x @ w_t, MXU-native rhs
        preferred_element_type=jnp.float32,
    )
    y = y + b_ref[...]
    y = jnp.minimum(jnp.maximum(y, CLAMP_MIN), CLAMP_MAX)
    o_ref[...] = y.astype(o_ref.dtype)


def prepare_params(weight, bias):
    """One-time param prep: transpose weight to [K, N]; bias as a (1, N) row."""
    w_t = jnp.asarray(weight, dtype=jnp.float32).T            # (180, 64)
    b_row = jnp.asarray(bias, dtype=jnp.float32).reshape(1, OUT_FEATURES)
    return w_t, b_row


def linear_clamp(x, w_t, b_row, *, block_b=4096):
    B, K = x.shape
    assert K == IN_FEATURES

    # Pad batch only to a multiple of 8 (sublane); never to a multiple of tb.
    padded_B = _round_up(max(B, 1), 8)
    if padded_B != B:
        x = jnp.pad(x, ((0, padded_B - B), (0, 0)))

    tb = min(block_b, padded_B)          # tb is a multiple of 8
    grid = (pl.cdiv(padded_B, tb),)      # ragged last block handled by Pallas

    cost = pl.CostEstimate(
        flops=2 * padded_B * K * OUT_FEATURES,
        bytes_accessed=4 * (padded_B * K + padded_B * OUT_FEATURES
                            + K * OUT_FEATURES + OUT_FEATURES),
        transcendentals=0,
    )

    out = pl.pallas_call(
        linear_clamp_kernel,
        out_shape=jax.ShapeDtypeStruct((padded_B, OUT_FEATURES), jnp.float32),
        grid=grid,
        in_specs=[
            pl.BlockSpec((tb, K), lambda i: (i, 0)),               # x batch tile
            pl.BlockSpec((K, OUT_FEATURES), lambda i: (0, 0)),     # weight, resident
            pl.BlockSpec((1, OUT_FEATURES), lambda i: (0, 0)),     # bias, resident
        ],
        out_specs=pl.BlockSpec((tb, OUT_FEATURES), lambda i: (i, 0)),
        compiler_params=pltpu.CompilerParams(
            dimension_semantics=("parallel",),
        ),
        cost_estimate=cost,
    )(x, w_t, b_row)

    # Only a (cheap) row slice when the batch had to be padded to a multiple of 8.
    return out if padded_B == B else out[:B]


if __name__ == "__main__":
    key = jax.random.PRNGKey(0)
    kx, kw, kb = jax.random.split(key, 3)

    # PyTorch nn.Linear init style: U[-1/sqrt(fan_in), 1/sqrt(fan_in)]
    bound = 1.0 / (IN_FEATURES ** 0.5)
    weight = jax.random.uniform(kw, (OUT_FEATURES, IN_FEATURES),
                                minval=-bound, maxval=bound, dtype=jnp.float32)
    bias = jax.random.uniform(kb, (OUT_FEATURES,),
                              minval=-bound, maxval=bound, dtype=jnp.float32)

    # Small batch consistent with the module's (1, 180) input.
    x = jax.random.normal(kx, (2, IN_FEATURES), dtype=jnp.float32)

    w_t, b_row = prepare_params(weight, bias)   # one-time, outside the hot path
    out = linear_clamp(x, w_t, b_row)
    jax.block_until_ready(out)

    # Reference: clamp_min then clamp_max == clip since 0.5 < 1/sqrt(2).
    ref = jnp.clip(x @ weight.T + bias, CLAMP_MIN, CLAMP_MAX)
    assert out.shape == (2, OUT_FEATURES)
    assert jnp.allclose(out, ref, atol=1e-5, rtol=1e-5)

    print("KERNEL_OK")
</pallas_src>

<mosaic_0001>
module attributes {stable_mosaic.version = 11 : i64} {
  func.func @linear_clamp_kernel(%arg0: i32, %arg1: memref<8x180xf32, #tpu.memory_space<vmem>>, %arg2: memref<180x64xf32, #tpu.memory_space<vmem>>, %arg3: memref<1x64xf32, #tpu.memory_space<vmem>>, %arg4: memref<8x64xf32, #tpu.memory_space<vmem>>) attributes {dimension_semantics = [#tpu.dimension_semantics<parallel>], iteration_bounds = array<i64: 1>, scalar_prefetch = 0 : i64, scratch_operands = 0 : i64, tpu.core_type = #tpu.core_type<tc>, window_params = [{transform_indices = @transform_0, window_bounds = array<i64: 8, 180>}, {pipeline_mode = #tpu.pipeline_mode<synchronous>, transform_indices = @transform_1, window_bounds = array<i64: 180, 64>}, {pipeline_mode = #tpu.pipeline_mode<synchronous>, transform_indices = @transform_2, window_bounds = array<i64: 1, 64>}, {transform_indices = @transform_3, window_bounds = array<i64: 8, 64>}]} {
    %c0 = arith.constant 0 : index
    %c0_0 = arith.constant 0 : index
    %0 = vector.load %arg1[%c0, %c0_0] : memref<8x180xf32, #tpu.memory_space<vmem>>, vector<8x180xf32>
    %c0_1 = arith.constant 0 : index
    %c0_2 = arith.constant 0 : index
    %1 = vector.load %arg2[%c0_1, %c0_2] : memref<180x64xf32, #tpu.memory_space<vmem>>, vector<180x64xf32>
    %cst = arith.constant dense<0.000000e+00> : vector<8x64xf32>
    %2 = tpu.matmul %0, %1, %cst {dimension_numbers = #tpu.dot_dimension_numbers<[1], [0], [0], [1], [0, 0, 1, 1], [], []>} : vector<8x180xf32>, vector<180x64xf32>, vector<8x64xf32> -> vector<8x64xf32>
    %c0_3 = arith.constant 0 : index
    %c0_4 = arith.constant 0 : index
    %3 = vector.load %arg3[%c0_3, %c0_4] : memref<1x64xf32, #tpu.memory_space<vmem>>, vector<1x64xf32>
    %4 = vector.broadcast %3 : vector<1x64xf32> to vector<8x64xf32>
    %5 = arith.addf %2, %4 : vector<8x64xf32>
    %cst_5 = arith.constant 5.000000e-01 : f32
    %6 = vector.broadcast %cst_5 : f32 to vector<8x64xf32>
    %7 = arith.maximumf %5, %6 : vector<8x64xf32>
    %cst_6 = arith.constant 0.707106769 : f32
    %8 = vector.broadcast %cst_6 : f32 to vector<8x64xf32>
    %9 = arith.minimumf %7, %8 : vector<8x64xf32>
    %c0_7 = arith.constant 0 : index
    %c0_8 = arith.constant 0 : index
    %10 = vector.load %arg4[%c0_7, %c0_8] : memref<8x64xf32, #tpu.memory_space<vmem>>, vector<8x64xf32>
    tpu.vector_store %arg4[%c0_7, %c0_8], %9 {strides = array<i32>} : memref<8x64xf32, #tpu.memory_space<vmem>>, vector<8x64xf32>,
    return
  }
  func.func @transform_0(%arg0: i32) -> (i32, i32) {
    %c0_i32 = arith.constant 0 : i32
    %c0_i32_0 = arith.constant 0 : i32
    return %arg0, %c0_i32 : i32, i32
  }
  func.func @transform_1(%arg0: i32) -> (i32, i32) {
    %c0_i32 = arith.constant 0 : i32
    %c0_i32_0 = arith.constant 0 : i32
    %c0_i32_1 = arith.constant 0 : i32
    return %c0_i32, %c0_i32_0 : i32, i32
  }
  func.func @transform_2(%arg0: i32) -> (i32, i32) {
    %c0_i32 = arith.constant 0 : i32
    %c0_i32_0 = arith.constant 0 : i32
    %c0_i32_1 = arith.constant 0 : i32
    return %c0_i32, %c0_i32_0 : i32, i32
  }
  func.func @transform_3(%arg0: i32) -> (i32, i32) {
    %c0_i32 = arith.constant 0 : i32
    %c0_i32_0 = arith.constant 0 : i32
    return %arg0, %c0_i32 : i32, i32
  }
}

</mosaic_0001>

<bundles_post_ra>
// kernel: tpu_custom_call.1
= control target key start
LH: loop header
LB: loop body
LE: loop exit
PB: predicated region body
PF: predicated region fallthrough
CT: control target
= control target key end

     0   :  { %v170_v1 = vmov 0.0   ;;  %vm47_vm0 = vcmask 424960   ;;  %s296_s0 = inlined_call_operand.vmem [shape: f32[8,180], index: 0, kind: input, shape index: {}]   ;;  %s297_s1 = inlined_call_operand.vmem [shape: f32[180,64], index: 1, kind: input, shape index: {}]   ;;  %s298_s2 = inlined_call_operand.vmem [shape: f32[1,64], index: 2, kind: input, shape index: {}]   ;;  %s299_s3 = inlined_call_operand.hbm [shape: f32[8,64], index: 3, kind: output, shape index: {}]  }
   0x1   :  { %v32_v0 = vld [vmem:[%s297_s1 + $0x78] sm:$0xff]  ;;  %55 = vmatprep.subr.mxu0 %v170_v1  ;;  %v31_v2 = vld [vmem:[%s297_s1 + $0x70] sm:$0xff]  ;;  %v30_v3 = vld [vmem:[%s297_s1 + $0x68] sm:$0xff] }
   0x2   :  { %56 = vmatpush1.msra.mxu0 %v32_v0  ;;  %v29_v4 = vld [vmem:[%s297_s1 + $0x60] sm:$0xff]  ;;  %v28_v5 = vld [vmem:[%s297_s1 + $0x58] sm:$0xff]  ;;  %v16_v6 = vld [vmem:[%s296_s0 + $0x8] sm:$0xff] }
   0x3   :  { %57 = vmatprep.subr.mxu0 %v170_v1  ;;  %145 = vmatprep.mubr.msk.f32.mxu0 %vm47_vm0, %v16_v6 }
   0x4   :  { %58 = vmatpush1.msra.mxu0 %v31_v2 }
   0x5   :  { %59 = vmatprep.subr.mxu0 %v170_v1 }
   0x6   :  { %60 = vmatpush1.msra.mxu0 %v30_v3 }
   0x7   :  { %61 = vmatprep.subr.mxu0 %v170_v1 }
   0x8   :  { %62 = vmatpush1.msra.mxu0 %v29_v4 }
   0x9   :  { %8 = vsyncpa [#allocation3], 0  ;;  %63 = vmatprep.subr.mxu0 %v170_v1  ;;  %v27_v7 = vld [vmem:[%s297_s1 + $0x50] sm:$0xff]  ;;  %v26_v8 = vld [vmem:[%s297_s1 + $0x48] sm:$0xff]  ;;  %vm51_vm1 = vcmask 1043456   ;;  %s171_s10 = smov [#allocation2]  }
   0xa   :  { %64 = vmatpush1.msra.mxu0 %v28_v5  ;;  %v25_v9 = vld [vmem:[%s297_s1 + $0x40] sm:$0xff]  ;;  %v24_v10 = vld [vmem:[%s297_s1 + $0x38] sm:$0xff]  ;;  %v23_v11 = vld [vmem:[%s297_s1 + $0x30] sm:$0xff]  ;;  %s135_s11 = sshll.u32 %s171_s10, 4  ;;  %vm127_vm2 = vcmask 523264   ;;  %s136_s11 = int_to_ptr.vmem [resolvable:$true] %s135_s11 }
   0xb   :  { %65 = vmatprep.subr.mxu0 %v170_v1  ;;  %v22_v12 = vld [vmem:[%s297_s1 + $0x28] sm:$0xff]  ;;  %v21_v13 = vld [vmem:[%s297_s1 + $0x20] sm:$0xff]  ;;  %v20_v14 = vld [vmem:[%s297_s1 + $0x18] sm:$0xff]  ;;  %p153_p1 = scmp.lt.s32.totalorder %s136_s11, %s136_s11 }
   0xc   :  { %66 = vmatpush1.msra.mxu0 %v27_v7  ;;  %v19_v15 = vld [vmem:[%s297_s1 + $0x10] sm:$0xff]  ;;  %v18_v16 = vld [vmem:[%s297_s1 + $0x8] sm:$0xff]  ;;  %v17_v17 = vld [vmem:[%s297_s1] sm:$0xff] }
   0xd   :  { %67 = vmatprep.subr.mxu0 %v170_v1  ;;  %v39_v18 = vld [vmem:[%s297_s1 + $0xb0] sm:$0xf]  ;;  %v38_v19 = vld [vmem:[%s297_s1 + $0xa8] sm:$0xff]  ;;  %v37_v20 = vld [vmem:[%s297_s1 + $0xa0] sm:$0xff] }
   0xe   :  { %68 = vmatpush1.msra.mxu0 %v26_v8  ;;  %v36_v21 = vld [vmem:[%s297_s1 + $0x98] sm:$0xff]  ;;  %v35_v22 = vld [vmem:[%s297_s1 + $0x90] sm:$0xff]  ;;  %v34_v23 = vld [vmem:[%s297_s1 + $0x88] sm:$0xff] }
   0xf   :  { %69 = vmatprep.subr.mxu0 %v170_v1  ;;  %v33_v24 = vld [vmem:[%s297_s1 + $0x80] sm:$0xff]  ;;  %s148_s1 = scalar_lea.vmem %s136_s11, 128 }
  0x10   :  { %70 = vmatpush1.msra.mxu0 %v25_v9  ;;  %v15_v25 = vld [vmem:[%s296_s0] sm:$0xff]  ;;  %p149_p0 = scmp.ne.s32.totalorder %s136_s11, %s148_s1  ;;  %p154_p2 = scmp.lt.s32.totalorder %s148_s1, %s148_s1 }
  0x11   :  { %71 = vmatprep.subr.mxu0 %v170_v1  ;;  %v143_v26 = vld [vmem:[%s298_s2] ss:$0 sm:$0xff] }
  0x12   :  { %72 = vmatpush1.msra.mxu0 %v24_v10  ;;  %p155_p3 = por %p154_p2, %p153_p1 }
  0x13   :  { %73 = vmatprep.subr.mxu0 %v170_v1 }
  0x14   :  { %74 = vmatpush1.msra.mxu0 %v23_v11  ;;  %p156_p4 = pnand %p155_p3, %p149_p0 }
  0x15   :  { %75 = vmatprep.subr.mxu0 %v170_v1 }
  0x16   :  { %76 = vmatpush1.msra.mxu0 %v22_v12 }
  0x17   :  { %77 = vmatprep.subr.mxu0 %v170_v1 }
  0x18   :  { %78 = vmatpush1.msra.mxu0 %v21_v13 }
  0x19   :  { %79 = vmatprep.subr.mxu0 %v170_v1 }
  0x1a   :  { %80 = vmatpush1.msra.mxu0 %v20_v14 }
  0x1b   :  { %81 = vmatprep.subr.mxu0 %v170_v1 }
  0x1c   :  { %82 = vmatpush1.msra.mxu0 %v19_v15 }
  0x1d   :  { %83 = vmatprep.subr.mxu0 %v170_v1 }
  0x1e   :  { %84 = vmatpush1.msra.mxu0 %v18_v16 }
  0x1f   :  { %85 = vmatprep.subr.mxu0 %v170_v1 }
  0x20   :  { %86 = vmatpush1.msra.mxu0 %v17_v17 }
  0x21   :  { %105 = vmatprep.subr.mxu0 %v170_v1 }
  0x22   :  { %144 = vmatpush2.msk.msra.mxu0 %vm51_vm1, %v39_v18 }
  0x23   :  { %107 = vmatprep.subr.mxu0 %v170_v1 }
  0x24   :  { %108 = vmatpush2.msra.mxu0 %v38_v19 }
  0x25   :  { %109 = vmatprep.subr.mxu0 %v170_v1 }
  0x26   :  { %110 = vmatpush2.msra.mxu0 %v37_v20 }
  0x27   :  { %111 = vmatprep.subr.mxu0 %v170_v1 }
  0x28   :  { %112 = vmatpush2.msra.mxu0 %v36_v21 }
  0x29   :  { %113 = vmatprep.subr.mxu0 %v170_v1 }
  0x2a   :  { %114 = vmatpush2.msra.mxu0 %v35_v22 }
  0x2b   :  { %115 = vmatprep.subr.mxu0 %v170_v1 }
  0x2c   :  { %116 = vmatpush2.msra.mxu0 %v34_v23 }
  0x2d   :  { %117 = vmatprep.subr.mxu0 %v170_v1 }
  0x2e   :  { %118 = vmatpush2.msra.mxu0 %v33_v24 }
  0x2f   :  { %120 = vmatmul.mubr.f32.vlgmr.msra.gmra.mxu0 %v15_v25 }
  0xef   :  { %v121_v27 = vpop.f32.mrf.mxu0 }
  0xf0   :  { %v122_v28 = vadd.f32 %v143_v26, %v121_v27 }
  0xf1   :  { %v123_v29 = vpop.f32.mrf.mxu0 }
  0xf2   :  { %v125_v30 = vmax.f32 %v122_v28, 0.5 }
  0xf4   :  { %v126_v31 = vmin.f32 %v125_v30, 0.70710677 }
  0xf6   :  { %128 = vst.msk [vmem:[#allocation2] sm:$0xff] %vm127_vm2, %v126_v31 }
  0xf7   :  { %159 = shalt.err (!%p156_p4)
}
  0xf8   :  { %138 = dma.vmem_to_hbm [thread:$0]  %s136_s11, 128, %s299_s3, [#allocation3]  }
  0xf9   :  { %168 = dma.done.wait [#allocation3], 128  }
  0xfa   :  { %169 = vsyncadd [#allocation3], 4294967168 }
  0xfb   :  { %142 = vsyncpa [#allocation3], 1 }

</bundles_post_ra>
